<compile_context>
chip_gen: v6e
topology: v6e:2x2x1
jax: 0.10.0
libtpu: 0.0.40
codegen_flags: <defaults>
</compile_context>

<pallas_src>
import functools

import jax
import jax.numpy as jnp
from jax.experimental import pallas as pl
from jax.experimental.pallas import tpu as pltpu

_VMEM_LIMIT = 48 * 1024 * 1024      # safe on v5e/v6e (128 MiB phys) and v7x (64 MiB phys)
_BLOCK_BUDGET = 2 * 1024 * 1024     # target bytes per x block (Pallas double-buffers it)


# ---------------------------------------------------------------------------
# Pass 1: global average pool over H*W + excitation MLP -> per-(B, C) gate.
# ---------------------------------------------------------------------------
def _pool_excite_kernel(x_ref, w1t_ref, w2t_ref, gate_ref, acc_ref, *, inv_hw):
    # x_ref:    (tb, C, thw)  current spatial slab of the batch tile
    # w1t_ref:  (C, hidden)   fc[0].weight pre-transposed (resident, fetched once)
    # w2t_ref:  (hidden, C)   fc[2].weight pre-transposed
    # gate_ref: (tb, C)       output gate, written only on the last spatial step
    # acc_ref:  (tb, C) f32   running spatial sum
    k = pl.program_id(1)

    @pl.when(k == 0)
    def _():
        acc_ref[...] = jnp.zeros_like(acc_ref)

    # f32 accumulation without materializing an f32 copy of the x tile.
    acc_ref[...] += jnp.sum(x_ref[...], axis=-1, dtype=jnp.float32)

    @pl.when(k == pl.num_programs(1) - 1)
    def _():
        y = acc_ref[...] * inv_hw                                   # (tb, C) mean
        h = jnp.dot(y, w1t_ref[...], preferred_element_type=jnp.float32)
        h = jnp.maximum(h, 0.0)
        s = jnp.dot(h, w2t_ref[...], preferred_element_type=jnp.float32)
        gate_ref[...] = jax.nn.sigmoid(s)


# ---------------------------------------------------------------------------
# Pass 2: broadcasted per-channel scale, lane-dense (B*C, HW) layout.
# ---------------------------------------------------------------------------
def _scale_kernel(x_ref, gate_ref, o_ref):
    # x_ref: (tr, tc)   gate_ref: (tr, 1) f32   o_ref: (tr, tc)
    o_ref[...] = x_ref[...] * gate_ref[...].astype(o_ref.dtype)


def _pick_tile(total, unit, max_tile):
    """Largest multiple of `unit` that divides `total` and is <= max_tile (else full axis)."""
    if total % unit != 0:
        return total
    best = None
    t = unit
    while t <= min(total, max_tile):
        if total % t == 0:
            best = t
        t += unit
    return best if best is not None else total


def se_layer(x, w1, w2):
    """SELayer forward. x: (B, C, H, W); w1: (hidden, C); w2: (C, hidden)."""
    B, C, H, W = x.shape
    hidden = w1.shape[0]
    HW = H * W
    itemsize = x.dtype.itemsize

    # Pad flattened spatial axis up to the 128-lane width (zeros don't change sums).
    HWp = ((HW + 127) // 128) * 128
    x3 = x.reshape(B, C, HW)
    if HWp != HW:
        x3 = jnp.pad(x3, ((0, 0), (0, 0), (0, HWp - HW)))

    # Pre-transpose the tiny weights once in the wrapper (no in-kernel relayout).
    w1t = jnp.transpose(w1)          # (C, hidden)
    w2t = jnp.transpose(w2)          # (hidden, C)

    # ---------------- Pass 1: pool + excite -> gate (B, C) f32 ----------------
    tb = _pick_tile(B, 1, 8)         # small batch tile; excitation MLP runs per tile
    thw_max = max(128, (_BLOCK_BUDGET // max(1, tb * C * itemsize)) // 128 * 128)
    thw = _pick_tile(HWp, 128, thw_max)
    grid1 = (B // tb, HWp // thw)

    gate = pl.pallas_call(
        functools.partial(_pool_excite_kernel, inv_hw=1.0 / float(HW)),
        out_shape=jax.ShapeDtypeStruct((B, C), jnp.float32),
        grid=grid1,
        in_specs=[
            pl.BlockSpec((tb, C, thw), lambda i, k: (i, 0, k)),
            pl.BlockSpec((C, hidden), lambda i, k: (0, 0)),
            pl.BlockSpec((hidden, C), lambda i, k: (0, 0)),
        ],
        out_specs=pl.BlockSpec((tb, C), lambda i, k: (i, 0)),
        scratch_shapes=[pltpu.VMEM((tb, C), jnp.float32)],
        compiler_params=pltpu.CompilerParams(
            dimension_semantics=("parallel", "arbitrary"),
            vmem_limit_bytes=_VMEM_LIMIT,
        ),
    )(x3, w1t, w2t)

    # ---------------- Pass 2: out = x * gate (lane-dense tiles) ---------------
    R = B * C
    x2 = x3.reshape(R, HWp)
    gate2 = gate.reshape(R, 1)

    tc = _pick_tile(HWp, 128, 2048)
    tr_max = max(8, (_BLOCK_BUDGET // max(1, tc * itemsize)) // 8 * 8)
    tr = _pick_tile(R, 8, tr_max)
    grid2 = (R // tr, HWp // tc)

    out2 = pl.pallas_call(
        _scale_kernel,
        out_shape=jax.ShapeDtypeStruct((R, HWp), x.dtype),
        grid=grid2,
        in_specs=[
            pl.BlockSpec((tr, tc), lambda i, j: (i, j)),
            pl.BlockSpec((tr, 1), lambda i, j: (i, 0)),
        ],
        out_specs=pl.BlockSpec((tr, tc), lambda i, j: (i, j)),
        compiler_params=pltpu.CompilerParams(
            dimension_semantics=("parallel", "parallel"),
            vmem_limit_bytes=_VMEM_LIMIT,
        ),
    )(x2, gate2)

    out = out2.reshape(B, C, HWp)
    if HWp != HW:
        out = out[:, :, :HW]
    return out.reshape(B, C, H, W)


def xavier_uniform(key, shape):
    # nn.init.xavier_uniform_ on a Linear weight of shape (fan_out, fan_in)
    fan_out, fan_in = shape
    bound = (6.0 / (fan_in + fan_out)) ** 0.5
    return jax.random.uniform(key, shape, jnp.float32, minval=-bound, maxval=bound)


if __name__ == "__main__":
    B, C, H, W = 2, 4, 16, 16

    # Reduction logic from __init__: channel=4, 4 // 16 == 0 -> reduction = channel = 4
    reduction = C if C // 16 == 0 else 16
    hidden = C // reduction  # = 1 for C=4

    key = jax.random.PRNGKey(0)
    kx, k1, k2 = jax.random.split(key, 3)

    x = jax.random.normal(kx, (B, C, H, W), dtype=jnp.float32)
    w1 = xavier_uniform(k1, (hidden, C))   # fc[0].weight
    w2 = xavier_uniform(k2, (C, hidden))   # fc[2].weight

    out = se_layer(x, w1, w2)
    jax.block_until_ready(out)

    # Pure-JAX reference check of the same math.
    y_ref = jnp.mean(x, axis=(2, 3))
    s_ref = jax.nn.sigmoid(jnp.maximum(y_ref @ w1.T, 0.0) @ w2.T)
    ref = x * s_ref[:, :, None, None]
    assert jnp.allclose(out, ref, atol=1e-5, rtol=1e-5)

    print("KERNEL_OK")
</pallas_src>

<mosaic_0001>
module attributes {stable_mosaic.version = 11 : i64} {
  func.func @_pool_excite_kernel(%arg0: i32, %arg1: i32, %arg2: memref<2x4x256xf32, #tpu.memory_space<vmem>>, %arg3: memref<4x1xf32, #tpu.memory_space<vmem>>, %arg4: memref<1x4xf32, #tpu.memory_space<vmem>>, %arg5: memref<2x4xf32, #tpu.memory_space<vmem>>, %arg6: memref<2x4xf32, #tpu.memory_space<vmem>>) attributes {dimension_semantics = [#tpu.dimension_semantics<parallel>, #tpu.dimension_semantics<arbitrary>], iteration_bounds = array<i64: 1, 1>, scalar_prefetch = 0 : i64, scratch_operands = 1 : i64, tpu.core_type = #tpu.core_type<tc>, window_params = [{transform_indices = @transform_0, window_bounds = array<i64: 2, 4, 256>}, {pipeline_mode = #tpu.pipeline_mode<synchronous>, transform_indices = @transform_1, window_bounds = array<i64: 4, 1>}, {pipeline_mode = #tpu.pipeline_mode<synchronous>, transform_indices = @transform_2, window_bounds = array<i64: 1, 4>}, {transform_indices = @transform_3, window_bounds = array<i64: 2, 4>}]} {
    %c0_i32 = arith.constant 0 : i32
    %0 = arith.cmpi eq, %arg1, %c0_i32 : i32
    %1 = arith.extui %0 : i1 to i32
    %c0_i32_0 = arith.constant 0 : i32
    %2 = arith.cmpi ne, %1, %c0_i32_0 : i32
    scf.if %2 {
      %cst_9 = arith.constant 0.000000e+00 : f32
      %11 = vector.broadcast %cst_9 : f32 to vector<2x4xf32>
      %c0_10 = arith.constant 0 : index
      %c0_11 = arith.constant 0 : index
      %12 = vector.load %arg6[%c0_10, %c0_11] : memref<2x4xf32, #tpu.memory_space<vmem>>, vector<2x4xf32>
      tpu.vector_store %arg6[%c0_10, %c0_11], %11 {strides = array<i32>} : memref<2x4xf32, #tpu.memory_space<vmem>>, vector<2x4xf32>,
    } else {
    }
    %c0 = arith.constant 0 : index
    %c0_1 = arith.constant 0 : index
    %3 = vector.load %arg6[%c0, %c0_1] : memref<2x4xf32, #tpu.memory_space<vmem>>, vector<2x4xf32>
    %c0_2 = arith.constant 0 : index
    %c0_3 = arith.constant 0 : index
    %c0_4 = arith.constant 0 : index
    %4 = vector.load %arg2[%c0_2, %c0_3, %c0_4] : memref<2x4x256xf32, #tpu.memory_space<vmem>>, vector<2x4x256xf32>
    %cst = arith.constant dense<0.000000e+00> : vector<2x4xf32>
    %5 = vector.multi_reduction <add>, %4, %cst [2] : vector<2x4x256xf32> to vector<2x4xf32>
    %6 = arith.addf %3, %5 : vector<2x4xf32>
    %c0_5 = arith.constant 0 : index
    %c0_6 = arith.constant 0 : index
    %7 = vector.load %arg6[%c0_5, %c0_6] : memref<2x4xf32, #tpu.memory_space<vmem>>, vector<2x4xf32>
    tpu.vector_store %arg6[%c0_5, %c0_6], %6 {strides = array<i32>} : memref<2x4xf32, #tpu.memory_space<vmem>>, vector<2x4xf32>,
    %c0_i32_7 = arith.constant 0 : i32
    %8 = arith.cmpi eq, %arg1, %c0_i32_7 : i32
    %9 = arith.extui %8 : i1 to i32
    %c0_i32_8 = arith.constant 0 : i32
    %10 = arith.cmpi ne, %9, %c0_i32_8 : i32
    scf.if %10 {
      %c0_9 = arith.constant 0 : index
      %c0_10 = arith.constant 0 : index
      %11 = vector.load %arg6[%c0_9, %c0_10] : memref<2x4xf32, #tpu.memory_space<vmem>>, vector<2x4xf32>
      %cst_11 = arith.constant 3.906250e-03 : f32
      %12 = vector.broadcast %cst_11 : f32 to vector<2x4xf32>
      %13 = arith.mulf %11, %12 : vector<2x4xf32>
      %c0_12 = arith.constant 0 : index
      %c0_13 = arith.constant 0 : index
      %14 = vector.load %arg3[%c0_12, %c0_13] : memref<4x1xf32, #tpu.memory_space<vmem>>, vector<4x1xf32>
      %cst_14 = arith.constant dense<0.000000e+00> : vector<2x1xf32>
      %15 = tpu.matmul %13, %14, %cst_14 {dimension_numbers = #tpu.dot_dimension_numbers<[1], [0], [0], [1], [0, 0, 1, 1], [], []>} : vector<2x4xf32>, vector<4x1xf32>, vector<2x1xf32> -> vector<2x1xf32>
      %cst_15 = arith.constant 0.000000e+00 : f32
      %16 = vector.broadcast %cst_15 : f32 to vector<2x1xf32>
      %17 = arith.maximumf %15, %16 : vector<2x1xf32>
      %c0_16 = arith.constant 0 : index
      %c0_17 = arith.constant 0 : index
      %18 = vector.load %arg4[%c0_16, %c0_17] : memref<1x4xf32, #tpu.memory_space<vmem>>, vector<1x4xf32>
      %cst_18 = arith.constant dense<0.000000e+00> : vector<2x4xf32>
      %19 = tpu.matmul %17, %18, %cst_18 {dimension_numbers = #tpu.dot_dimension_numbers<[1], [0], [0], [1], [0, 0, 1, 1], [], []>} : vector<2x1xf32>, vector<1x4xf32>, vector<2x4xf32> -> vector<2x4xf32>
      %20 = arith.negf %19 : vector<2x4xf32>
      %21 = math.exp %20 : vector<2x4xf32>
      %cst_19 = arith.constant 1.000000e+00 : f32
      %22 = vector.broadcast %cst_19 : f32 to vector<2x4xf32>
      %23 = arith.addf %22, %21 : vector<2x4xf32>
      %24 = arith.divf %22, %23 : vector<2x4xf32>
      %c0_20 = arith.constant 0 : index
      %c0_21 = arith.constant 0 : index
      %25 = vector.load %arg5[%c0_20, %c0_21] : memref<2x4xf32, #tpu.memory_space<vmem>>, vector<2x4xf32>
      tpu.vector_store %arg5[%c0_20, %c0_21], %24 {strides = array<i32>} : memref<2x4xf32, #tpu.memory_space<vmem>>, vector<2x4xf32>,
    } else {
    }
    return
  }
  func.func @transform_0(%arg0: i32, %arg1: i32) -> (i32, i32, i32) {
    %c0_i32 = arith.constant 0 : i32
    %c0_i32_0 = arith.constant 0 : i32
    return %arg0, %c0_i32, %arg1 : i32, i32, i32
  }
  func.func @transform_1(%arg0: i32, %arg1: i32) -> (i32, i32) {
    %c0_i32 = arith.constant 0 : i32
    %c0_i32_0 = arith.constant 0 : i32
    %c0_i32_1 = arith.constant 0 : i32
    return %c0_i32, %c0_i32_0 : i32, i32
  }
  func.func @transform_2(%arg0: i32, %arg1: i32) -> (i32, i32) {
    %c0_i32 = arith.constant 0 : i32
    %c0_i32_0 = arith.constant 0 : i32
    %c0_i32_1 = arith.constant 0 : i32
    return %c0_i32, %c0_i32_0 : i32, i32
  }
  func.func @transform_3(%arg0: i32, %arg1: i32) -> (i32, i32) {
    %c0_i32 = arith.constant 0 : i32
    %c0_i32_0 = arith.constant 0 : i32
    return %arg0, %c0_i32 : i32, i32
  }
}

</mosaic_0001>

<bundles_post_ra>
// kernel: tpu_custom_call.1
= control target key start
LH: loop header
LB: loop body
LE: loop exit
PB: predicated region body
PF: predicated region fallthrough
CT: control target
= control target key end

     0   :  { %8 = vsyncpa [#allocation4], 0  ;;  %s379_s0 = inlined_call_operand.hbm [shape: f32[2,4,256], index: 0, kind: input, shape index: {}]   ;;  %s380_s1 = inlined_call_operand.vmem [shape: f32[4,1], index: 1, kind: input, shape index: {}]   ;;  %s381_s2 = inlined_call_operand.vmem [shape: f32[1,4], index: 2, kind: input, shape index: {}]   ;;  %s382_s3 = inlined_call_operand.hbm [shape: f32[2,4], index: 3, kind: output, shape index: {}]  }
   0x1   :  { %9 = vsyncpa [#allocation5], 0  ;;  %s333_s12 = smov [#allocation3]  }
   0x2   :  { %s15_s13 = sshll.u32 %s333_s12, 4  ;;  %s16_s13 = int_to_ptr.vmem [resolvable:$true] %s15_s13 }
   0x3   :  { %s297_s14 = scalar_lea.vmem %s16_s13, 256  ;;  %p302_p1 = scmp.lt.s32.totalorder %s16_s13, %s16_s13 }
   0x4   :  { %p298_p0 = scmp.ne.s32.totalorder %s16_s13, %s297_s14  ;;  %p303_p2 = scmp.lt.s32.totalorder %s297_s14, %s297_s14 }
   0x6   :  { %p304_p3 = por %p303_p2, %p302_p1 }
   0x8   :  { %p305_p4 = pnand %p304_p3, %p298_p0 }
   0xa   :  { %308 = shalt.err (!%p305_p4)
}
   0xb   :  { %s334_s15 = smov 128   ;;  %s335_s16 = smov 8  }
   0xc   :  { %21 = dma.hbm_to_vmem [thread:$0]  %s379_s0, 256, %s16_s13, [#allocation4], %s334_s15, %s334_s15, %s335_s16  }
   0xd   :  { %329 = dma.done.wait [#allocation4], 256  }
   0xe   :  { %330 = vsyncadd [#allocation4], 4294967040  ;;  %vm44_vm0 = vcmask 1043456   ;;  %v36_v0 = vld [vmem:[#allocation3] sm:$0xff]  ;;  %v37_v1 = vld [vmem:[#allocation3 + $0x8] sm:$0xff]  ;;  %vm33_vm1 = vcmask 25600   ;;  %v57_v12 = vlaneseq }
   0xf   :  { %v40_v2 = vcombine.high %v36_v0, %v36_v0  ;;  %v45_v3 = vsel %vm44_vm0, %v36_v0, 0.0  ;;  %v41_v4 = vcombine.high %v37_v1, %v37_v1  ;;  %v50_v6 = vsel %vm44_vm0, %v37_v1, 0.0  ;;  %v78_v11 = vld [vmem:[%s380_s1] sm:$0xf]  ;;  %s338_s21 = smov [#allocation6]  }
  0x10   :  { %v336_v10 = vmov 0.0   ;;  %vm337_vm2 = vmmov 0   ;;  %v58_v13 = vand.u32 127, %v57_v12  ;;  %v60_v14 = vshrl.u32 %v57_v12, 7  ;;  %v157_v25 = vld [vmem:[%s381_s2] sm:$0x1] }
  0x11   :  { %v46_v5 = vsel %vm44_vm0, %v40_v2, 0.0  ;;  %v51_v7 = vsel %vm44_vm0, %v41_v4, 0.0  ;;  %34 = vst.msk [vmem:[#allocation2] sm:$0x3] %vm33_vm1, %v336_v10  ;;  %267 = vmatprep.subr.mxu0 %v336_v10  ;;  %272 = vmatprep.subr.mxu1 %v336_v10  ;;  %vm67_vm3 = vcmask 1041409   ;;  %vm79_vm4 = vcmask 31744  }
  0x12   :  { %v47_v8 = vadd.f32 %v46_v5, %v45_v3  ;;  %v52_v9 = vadd.f32 %v51_v7, %v50_v6  ;;  %268 = vmatpush3.msk.msra.mxu0 %vm44_vm0, %v78_v11  ;;  %269 = vmatprep.mubr.msk.f32.mxu0 %vm337_vm2, %v336_v10  ;;  %v61_v16 = vsub.s32 %v58_v13, %v60_v14  ;;  %vm162_vm5 = vcmask 1040384   ;;  %s249_s22 = sshll.u32 %s338_s21, 4  ;;  %s250_s22 = int_to_ptr.vmem [resolvable:$true] %s249_s22 }
  0x13   :  { %274 = vmatprep.mubr.msk.f32.mxu1 %vm337_vm2, %v336_v10  ;;  %273 = vmatpush3.msk.msra.mxu1 %vm162_vm5, %v157_v25  ;;  %vm158_vm6 = vcmask 7168   ;;  %s309_s2 = scalar_lea.vmem %s250_s22, 32  ;;  %p314_p6 = scmp.lt.s32.totalorder %s250_s22, %s250_s22 }
  0x14   :  { %48 = vadd.xlane.f32.xlu0 %v47_v8  ;;  %p310_p5 = scmp.ne.s32.totalorder %s250_s22, %s309_s2  ;;  %p315_p7 = scmp.lt.s32.totalorder %s309_s2, %s309_s2 }
  0x16   :  { %p316_p8 = por %p315_p7, %p314_p6 }
  0x18   :  { %53 = vadd.xlane.f32.xlu0 %v52_v9  ;;  %v35_v20 = vld [vmem:[#allocation2] sm:$0x3]  ;;  %p317_p9 = pnand %p316_p8, %p310_p5 }
  0x9d   :  { %v49_v15 = vpop.xlane.xlu0 %48 }
  0x9e   :  { %v62_v18 = vrot.slane %v49_v15, %v61_v16 }
  0xa1   :  { %v54_v17 = vpop.xlane.xlu0 %53 }
  0xa2   :  { %v66_v19 = vrot.slane %v54_v17, %v61_v16 }
  0xa4   :  { %v68_v21 = vsel %vm67_vm3, %v66_v19, %v62_v18 }
  0xa5   :  { %v70_v22 = vadd.f32 %v68_v21, %v35_v20 }
  0xa7   :  { %72 = vst.msk [vmem:[#allocation2] sm:$0x3] %vm33_vm1, %v70_v22 }
  0xae   :  { %v76_v23 = vld [vmem:[#allocation2] sm:$0x3] }
  0xaf   :  { %v77_v24 = vmul.f32 0.00390625, %v76_v23 }
  0xb1   :  { %270 = vmatmul.mubr.msk.f32.vlgmr.msra.gmra.mxu0 %vm79_vm4, %v77_v24 }
 0x171   :  { %v152_v26 = vpop.f32.mrf.mxu0 }
 0x172   :  { %v156_v27 = vmax.f32 %v152_v26, 0.0 }
 0x173   :  { %v271_v28 = vpop.f32.mrf.mxu0 }
 0x174   :  { %275 = vmatmul.mubr.msk.f32.vlgmr.msra.gmra.mxu1 %vm158_vm6, %v156_v27 }
 0x234   :  { %v232_v29 = vpop.f32.mrf.mxu1 }
 0x235   :  { %v262_v30 = vmul.f32 -1.442695, %v232_v29 }
 0x236   :  { %v276_v31 = vpop.f32.mrf.mxu1 }
 0x237   :  { %285 = vpow2.f32 %v262_v30 }
 0x244   :  { %v286_v32 = vpop.eup %285 }
 0x245   :  { %v239_v33 = vadd.f32 1.0, %v286_v32 }
 0x247   :  { %287 = vrcp.f32 %v239_v33 }
 0x254   :  { %v288_v34 = vpop.eup %287 }
 0x255   :  { %242 = vst.msk [vmem:[#allocation6] sm:$0x3] %vm33_vm1, %v288_v34 }
 0x256   :  { %320 = shalt.err (!%p317_p9)
}
 0x257   :  { %252 = dma.vmem_to_hbm [thread:$0]  %s250_s22, 32, %s382_s3, [#allocation5]  }
 0x258   :  { %331 = dma.done.wait [#allocation5], 32  }
 0x259   :  { %332 = vsyncadd [#allocation5], 4294967264 }
 0x25a   :  { %256 = vsyncpa [#allocation4], 1 }
 0x25b   :  { %257 = vsyncpa [#allocation5], 1 }

</bundles_post_ra>
